<compile_context>
chip_gen: v7x
topology: tpu7x:2x2x1
jax: 0.10.0
libtpu: 0.0.40
codegen_flags: <defaults>
</compile_context>

<pallas_src>
import jax
import jax.numpy as jnp
from jax.experimental import pallas as pl
from jax.experimental.pallas import tpu as pltpu

_LANE = 128
_SUBLANE = 8


def _cdiv(a, b):
    return -(-a // b)


def _scale_kernel(scale_ref, x_ref, o_ref):
    # scale_ref: (1, 1) f32 scalar parameter in SMEM.
    # x_ref / o_ref: lane-dense VMEM tiles.
    s = scale_ref[0, 0]
    o_ref[...] = (x_ref[...] * s).astype(o_ref.dtype)


def _launch(scale, x2, out_dtype, max_tile_bytes, vmem_limit_bytes):
    """Run the kernel on a 2-D [rows, lanes] slab (lanes % 128 == 0)."""
    R, C = x2.shape
    itemsize = max(jnp.dtype(x2.dtype).itemsize, jnp.dtype(out_dtype).itemsize)
    row_bytes = C * itemsize
    budget_rows = max_tile_bytes // row_bytes

    if R <= budget_rows:
        # Whole array in a single block (full dims always satisfy (8,128) rule).
        tile_r, tile_c = R, C
    elif budget_rows >= _SUBLANE:
        # Row blocking only: biggest multiple-of-8 row tile that fits the budget.
        tile_r, tile_c = (budget_rows // _SUBLANE) * _SUBLANE, C
    else:
        # Even an 8-row slab of full width exceeds the budget -> block lanes too.
        tile_r = R if R < _SUBLANE else _SUBLANE
        tile_c = (max_tile_bytes // (tile_r * itemsize) // _LANE) * _LANE
        tile_c = max(_LANE, min(tile_c, C))

    if tile_c == C:
        grid = (_cdiv(R, tile_r),)
        x_spec = pl.BlockSpec((tile_r, C), lambda i: (i, 0))
        out_spec = pl.BlockSpec((tile_r, C), lambda i: (i, 0))
        dims = ("parallel",)
    else:
        grid = (_cdiv(R, tile_r), _cdiv(C, tile_c))
        x_spec = pl.BlockSpec((tile_r, tile_c), lambda i, j: (i, j))
        out_spec = pl.BlockSpec((tile_r, tile_c), lambda i, j: (i, j))
        dims = ("parallel", "parallel")

    return pl.pallas_call(
        _scale_kernel,
        out_shape=jax.ShapeDtypeStruct((R, C), out_dtype),
        grid=grid,
        in_specs=[
            pl.BlockSpec(memory_space=pltpu.SMEM),  # scalar parameter
            x_spec,
        ],
        out_specs=out_spec,
        compiler_params=pltpu.CompilerParams(
            dimension_semantics=dims,          # independent blocks -> TC sharding
            vmem_limit_bytes=vmem_limit_bytes,  # room for 8 MiB double-buffered tiles
        ),
    )(scale, x2)


def my_module_forward(existing, x, *,
                      max_tile_bytes=8 * 1024 * 1024,
                      vmem_limit_bytes=48 * 1024 * 1024):
    """Pallas equivalent of MyModule.forward: existing (0-d parameter) * x."""
    existing = jnp.asarray(existing)
    x = jnp.asarray(x)

    # Match torch promotion: a 0-d parameter tensor does not up-cast a lower-
    # precision floating tensor (f32[] * bf16 -> bf16); ints promote normally.
    if jnp.issubdtype(x.dtype, jnp.inexact):
        out_dtype = x.dtype
    else:
        out_dtype = jnp.result_type(existing.dtype, x.dtype)

    orig_shape = x.shape
    if x.size == 0:
        return (existing.astype(out_dtype) * x.astype(out_dtype)).reshape(orig_shape)

    scale = existing.astype(jnp.float32).reshape(1, 1)

    last = x.shape[-1] if x.ndim >= 1 else 1
    if x.ndim >= 1 and last >= _LANE and last % _LANE == 0:
        # Last dim is already lane-dense -> use it directly.
        x2 = x.reshape(-1, last)
        n_valid = None
    else:
        # Narrow / non-128-multiple last dim: flatten and re-chunk into wide
        # lane-dense rows (multiple of 128), padding at most one row's worth.
        flat = x.reshape(-1)
        n_valid = flat.shape[0]
        target = 4096
        L = target if n_valid >= target else _LANE * _cdiv(n_valid, _LANE)
        n_pad = L * _cdiv(n_valid, L)
        if n_pad != n_valid:
            flat = jnp.pad(flat, (0, n_pad - n_valid))
        x2 = flat.reshape(-1, L)

    out2 = _launch(scale, x2, out_dtype, max_tile_bytes, vmem_limit_bytes)

    if n_valid is None:
        return out2.reshape(orig_shape)
    return out2.reshape(-1)[:n_valid].reshape(orig_shape)


if __name__ == "__main__":
    key = jax.random.PRNGKey(0)
    k1, k2, k3, k4 = jax.random.split(key, 4)

    # Parameter: torch.ones([]) -> scalar 1.0 (deterministic init).
    existing = jnp.ones((), dtype=jnp.float32)

    # 1) Small lane-dense input (single full-array block path).
    x_small = jax.random.normal(k1, (16, 256), dtype=jnp.float32)
    out = my_module_forward(existing, x_small)
    jax.block_until_ready(out)
    exp = existing * x_small
    assert out.shape == exp.shape and out.dtype == exp.dtype
    assert jnp.allclose(out, exp, atol=1e-6, rtol=1e-6)

    # 2) Non-128-multiple last dim -> flatten + repack into a lane-dense slab.
    x_odd = jax.random.normal(k2, (4, 8, 37), dtype=jnp.float32)
    out = my_module_forward(existing, x_odd)
    jax.block_until_ready(out)
    exp = existing * x_odd
    assert out.shape == exp.shape and out.dtype == exp.dtype
    assert jnp.allclose(out, exp, atol=1e-6, rtol=1e-6)

    # 3) Multi-block row-tiled path (small VMEM budget forces grid=(8,)).
    x_multi = jax.random.normal(k3, (512, 256), dtype=jnp.float32)
    out = my_module_forward(existing, x_multi, max_tile_bytes=64 * 1024)
    jax.block_until_ready(out)
    exp = existing * x_multi
    assert out.shape == exp.shape and out.dtype == exp.dtype
    assert jnp.allclose(out, exp, atol=1e-6, rtol=1e-6)

    # 4) Lane-axis blocking path (a single 8-row slab exceeds the tiny budget).
    x_wide = jax.random.normal(k4, (16, 1024), dtype=jnp.float32)
    out = my_module_forward(existing, x_wide, max_tile_bytes=8 * 1024)
    jax.block_until_ready(out)
    exp = existing * x_wide
    assert out.shape == exp.shape and out.dtype == exp.dtype
    assert jnp.allclose(out, exp, atol=1e-6, rtol=1e-6)

    # 5) Non-unit scale value + bf16 input (dtype-demotion matches torch).
    existing2 = jnp.asarray(2.5, dtype=jnp.float32)
    x_bf16 = x_small.astype(jnp.bfloat16)
    out = my_module_forward(existing2, x_bf16)
    jax.block_until_ready(out)
    exp = (existing2 * x_bf16.astype(jnp.float32)).astype(jnp.bfloat16)
    assert out.shape == exp.shape and out.dtype == jnp.bfloat16
    assert jnp.allclose(out.astype(jnp.float32), exp.astype(jnp.float32),
                        atol=1e-2, rtol=1e-2)

    print("KERNEL_OK")
</pallas_src>

<mosaic_0001>
module attributes {stable_mosaic.version = 11 : i64} {
  func.func @_scale_kernel(%arg0: i32, %arg1: memref<1x1xf32, #tpu.memory_space<smem>>, %arg2: memref<16x256xf32, #tpu.memory_space<vmem>>, %arg3: memref<16x256xf32, #tpu.memory_space<vmem>>) attributes {dimension_semantics = [#tpu.dimension_semantics<parallel>], iteration_bounds = array<i64: 1>, scalar_prefetch = 0 : i64, scratch_operands = 0 : i64, tpu.core_type = #tpu.core_type<tc>, window_params = [{transform_indices = @transform_0, window_bounds = array<i64: 1, 1>}, {transform_indices = @transform_1, window_bounds = array<i64: 16, 256>}, {transform_indices = @transform_2, window_bounds = array<i64: 16, 256>}]} {
    %c0 = arith.constant 0 : index
    %c0_0 = arith.constant 0 : index
    %0 = memref.load %arg1[%c0, %c0_0] : memref<1x1xf32, #tpu.memory_space<smem>>
    %c0_1 = arith.constant 0 : index
    %c0_2 = arith.constant 0 : index
    %1 = vector.load %arg2[%c0_1, %c0_2] : memref<16x256xf32, #tpu.memory_space<vmem>>, vector<16x256xf32>
    %2 = vector.broadcast %0 : f32 to vector<16x256xf32>
    %3 = arith.mulf %1, %2 : vector<16x256xf32>
    %c0_3 = arith.constant 0 : index
    %c0_4 = arith.constant 0 : index
    %4 = vector.load %arg3[%c0_3, %c0_4] : memref<16x256xf32, #tpu.memory_space<vmem>>, vector<16x256xf32>
    tpu.vector_store %arg3[%c0_3, %c0_4], %3 {strides = array<i32>} : memref<16x256xf32, #tpu.memory_space<vmem>>, vector<16x256xf32>,
    return
  }
  func.func @transform_0(%arg0: i32) -> (i32, i32) {
    %c0_i32 = arith.constant 0 : i32
    %c0_i32_0 = arith.constant 0 : i32
    %c0_i32_1 = arith.constant 0 : i32
    return %c0_i32, %c0_i32_0 : i32, i32
  }
  func.func @transform_1(%arg0: i32) -> (i32, i32) {
    %c0_i32 = arith.constant 0 : i32
    %c0_i32_0 = arith.constant 0 : i32
    return %arg0, %c0_i32 : i32, i32
  }
  func.func @transform_2(%arg0: i32) -> (i32, i32) {
    %c0_i32 = arith.constant 0 : i32
    %c0_i32_0 = arith.constant 0 : i32
    return %arg0, %c0_i32 : i32, i32
  }
}

</mosaic_0001>

<bundles_post_ra>
// kernel: tpu_custom_call.1
= control target key start
LH: loop header
LB: loop body
LE: loop exit
PB: predicated region body
PF: predicated region fallthrough
CT: control target
= control target key end

     0   :  { %8 = vsyncpa [#allocation4], 0  ;;  %s162_s0 = inlined_call_operand.<no memory space> [shape: f32[1,1], index: 0, kind: input, shape index: {}]   ;;  %s163_s1 = inlined_call_operand.hbm [shape: f32[16,256], index: 1, kind: input, shape index: {}]   ;;  %s164_s2 = inlined_call_operand.hbm [shape: f32[16,256], index: 2, kind: output, shape index: {}]  }
   0x1   :  { %9 = vsyncpa [#allocation5], 0  ;;  %s110_s9 = smov [#allocation3]   ;;  %s62_s13 = scalar_lea.hbm %s163_s1, 512 }
   0x2   :  { %s17_s10 = sshll.u32 %s110_s9, 4  ;;  %p63_p0 = scmp.ne.s32.totalorder %s163_s1, %s62_s13  ;;  %s18_s10 = int_to_ptr.vmem [resolvable:$true] %s17_s10 }
   0x3   :  { %p66_p1 = scmp.lt.u32.totalorder %s62_s13, %s163_s1 }
   0x5   :  { %p68_p2 = pnand %p66_p1, %p63_p0 }
   0x7   :  { %71 = shalt.err (!%p68_p2)
}
   0x8   :  { %s72_s18 = scalar_lea.vmem %s18_s10, 512  ;;  %p77_p4 = scmp.lt.s32.totalorder %s18_s10, %s18_s10 }
   0x9   :  { %p73_p3 = scmp.ne.s32.totalorder %s18_s10, %s72_s18  ;;  %p78_p5 = scmp.lt.s32.totalorder %s72_s18, %s72_s18 }
   0xb   :  { %p79_p6 = por %p78_p5, %p77_p4 }
   0xd   :  { %p80_p7 = pnand %p79_p6, %p73_p3 }
   0xf   :  { %83 = shalt.err (!%p80_p7)
}
  0x10   :  { %s111_s19 = smov 256   ;;  %s112_s20 = smov 16  }
  0x11   :  { %23 = dma.hbm_to_vmem [thread:$0]  %s163_s1, 512, %s18_s10, [#allocation4], %s111_s19, %s111_s19, %s112_s20  }
  0x12   :  { %106 = dma.done.wait [#allocation4], 512  }
  0x13   :  { %107 = vsyncadd [#allocation4], 4294966784  ;;  %v32_v0 = vstv %s162_s0  ;;  %s113_s25 = smov [#allocation6]   ;;  %v28_v1 = vld [vmem:[#allocation3] sm:$0xff]  ;;  %v29_v2 = vld [vmem:[#allocation3 + $0x8] sm:$0xff] }
  0x14   :  { %s46_s26 = sshll.u32 %s113_s25, 4  ;;  %v30_v3 = vld [vmem:[#allocation3 + $0x10] sm:$0xff]  ;;  %v33_v4 = vmul.f32 %v32_v0, %v28_v1  ;;  %v34_v5 = vmul.f32 %v32_v0, %v29_v2  ;;  %v31_v7 = vld [vmem:[#allocation3 + $0x18] sm:$0xff]  ;;  %s47_s26 = int_to_ptr.vmem [resolvable:$true] %s46_s26 }
  0x15   :  { %v35_v6 = vmul.f32 %v32_v0, %v30_v3  ;;  %v36_v8 = vmul.f32 %v32_v0, %v31_v7  ;;  %s84_s1 = scalar_lea.vmem %s47_s26, 512  ;;  %p89_p9 = scmp.lt.s32.totalorder %s47_s26, %s47_s26 }
  0x16   :  { %37 = vst [vmem:[#allocation6] sm:$0xff] %v33_v4  ;;  %38 = vst [vmem:[#allocation6 + $0x8] sm:$0xff] %v34_v5  ;;  %p85_p8 = scmp.ne.s32.totalorder %s47_s26, %s84_s1  ;;  %p90_p10 = scmp.lt.s32.totalorder %s84_s1, %s84_s1 }
  0x17   :  { %39 = vst [vmem:[#allocation6 + $0x10] sm:$0xff] %v35_v6  ;;  %40 = vst [vmem:[#allocation6 + $0x18] sm:$0xff] %v36_v8 }
  0x18   :  { %p91_p11 = por %p90_p10, %p89_p9 }
  0x1a   :  { %p92_p12 = pnand %p91_p11, %p85_p8 }
  0x1c   :  { %95 = shalt.err (!%p92_p12)
}
  0x1d   :  { %s96_s28 = scalar_lea.hbm %s164_s2, 512 }
  0x1e   :  { %p97_p13 = scmp.ne.s32.totalorder %s164_s2, %s96_s28  ;;  %p100_p0 = scmp.lt.u32.totalorder %s96_s28, %s164_s2 }
  0x20   :  { %p102_p1 = pnand %p100_p0, %p97_p13 }
  0x22   :  { %105 = shalt.err (!%p102_p1)
}
  0x23   :  { %52 = dma.vmem_to_hbm [thread:$0]  %s47_s26, 512, %s164_s2, [#allocation5], %s111_s19, %s111_s19, %s112_s20  }
  0x24   :  { %108 = dma.done.wait [#allocation5], 512  }
  0x25   :  { %109 = vsyncadd [#allocation5], 4294966784 }
  0x26   :  { %56 = vsyncpa [#allocation4], 1 }
  0x27   :  { %57 = vsyncpa [#allocation5], 1 }

</bundles_post_ra>
